<compile_context>
chip_gen: v7x
topology: tpu7x:2x2x1
jax: 0.10.0
libtpu: 0.0.40
codegen_flags: <defaults>
</compile_context>

<pallas_src>
import jax
import jax.numpy as jnp
from jax.experimental import pallas as pl
from jax.experimental.pallas import tpu as pltpu


def _convlstm_kernel(x_ref, h_ref, c_ref, wx_ref, wh_ref, b_ref, hn_ref, cn_ref):
    # x_ref : (Cin, TL)   input tile, channels on sublanes, spatial on lanes
    # h_ref : (Ch,  TL)   hidden-state tile
    # c_ref : (Ch,  TL)   cell-state tile
    # wx_ref: (4*Ch, Cin) resident weight (input part)
    # wh_ref: (4*Ch, Ch)  resident weight (hidden part)
    # b_ref : (4*Ch, 1)   resident bias (zeros when module has bias=False)
    gates = (
        jnp.dot(wx_ref[...], x_ref[...], preferred_element_type=jnp.float32)
        + jnp.dot(wh_ref[...], h_ref[...], preferred_element_type=jnp.float32)
        + b_ref[...]
    )  # (4*Ch, TL) f32

    ch = hn_ref.shape[0]
    # Sublane slices at multiples of Ch (Ch is a multiple of 8 in practice).
    i_g = jax.nn.sigmoid(gates[0 * ch:1 * ch, :])   # input gate
    f_g = jax.nn.sigmoid(gates[1 * ch:2 * ch, :])   # forget gate
    o_g = jax.nn.sigmoid(gates[2 * ch:3 * ch, :])   # output gate
    g_g = jnp.tanh(gates[3 * ch:4 * ch, :])         # in_node

    c_next = f_g * c_ref[...].astype(jnp.float32) + i_g * g_g
    h_next = o_g * jnp.tanh(c_next)

    hn_ref[...] = h_next.astype(hn_ref.dtype)
    cn_ref[...] = c_next.astype(cn_ref.dtype)


def _pick_lane_tile(hw, cin, ch, vmem_budget=8 * 1024 * 1024):
    """Largest lane tile (multiple of 128, dividing H*W) within a VMEM budget."""
    if hw % 128 != 0:
        return hw  # full-extent block (always legal)
    # f32 bytes per lane column: x + h + c inputs and hn + cn outputs,
    # times 2 for double buffering.
    bytes_per_lane = 8 * (cin + 4 * ch)
    cap = max(128, vmem_budget // max(bytes_per_lane, 1))
    if hw <= cap:
        return hw
    for t in (8192, 4096, 2048, 1024, 512, 256, 128):
        if t <= cap and hw % t == 0:
            return t
    return 128


def conv_lstm_step(x_nchw, weight, bias=None, state=None):
    """One ConvLSTM forward step (kernel_size=1 path).

    x_nchw : (N, Cin, H, W)
    weight : (4*Ch, Cin+Ch)  -- nn.Conv2d 1x1 weight squeezed
    bias   : optional (4*Ch,)
    state  : optional (hidden, cell), each (N, Ch, H, W)
    returns (hidden_next, (hidden_next, cell_next)), all NCHW.
    """
    n, cin, hh, ww = x_nchw.shape
    four_ch, tot = weight.shape
    ch = four_ch // 4
    assert tot == cin + ch, "weight must be the squeezed (4*Ch, Cin+Ch) 1x1 conv weight"
    dtype = x_nchw.dtype

    if state is None:
        hidden = jnp.zeros((n, ch, hh, ww), dtype=dtype)
        cell = jnp.zeros((n, ch, hh, ww), dtype=dtype)
    else:
        hidden, cell = state

    hw = hh * ww
    tl = _pick_lane_tile(hw, cin, ch)
    n_lane = hw // tl

    # Free reshapes (N, C, H, W) -> (N, C, H*W); no transposes anywhere.
    x_r = x_nchw.reshape(n, cin, hw)
    h_r = hidden.reshape(n, ch, hw)
    c_r = cell.reshape(n, ch, hw)

    # Split the 1x1 conv weight once (outside the kernel / time loop).
    wx = weight[:, :cin]
    wh = weight[:, cin:]
    b = (jnp.zeros((four_ch, 1), jnp.float32) if bias is None
         else jnp.asarray(bias, jnp.float32).reshape(four_ch, 1))

    flops = 2 * n * hw * (cin + ch) * (4 * ch) + 10 * n * hw * ch
    transcendentals = 5 * n * hw * ch                       # 3 sigmoid + 2 tanh
    bytes_accessed = 4 * (x_r.size + h_r.size + c_r.size + wx.size + wh.size
                          + b.size + 2 * n * ch * hw)

    hn_r, cn_r = pl.pallas_call(
        _convlstm_kernel,
        out_shape=(
            jax.ShapeDtypeStruct((n, ch, hw), dtype),
            jax.ShapeDtypeStruct((n, ch, hw), dtype),
        ),
        grid_spec=pltpu.PrefetchScalarGridSpec(
            num_scalar_prefetch=0,
            grid=(n, n_lane),
            in_specs=[
                pl.BlockSpec((None, cin, tl), lambda bi, j: (bi, 0, j)),
                pl.BlockSpec((None, ch, tl), lambda bi, j: (bi, 0, j)),
                pl.BlockSpec((None, ch, tl), lambda bi, j: (bi, 0, j)),
                pl.BlockSpec((four_ch, cin), lambda bi, j: (0, 0)),   # resident
                pl.BlockSpec((four_ch, ch), lambda bi, j: (0, 0)),    # resident
                pl.BlockSpec((four_ch, 1), lambda bi, j: (0, 0)),     # resident
            ],
            out_specs=(
                pl.BlockSpec((None, ch, tl), lambda bi, j: (bi, 0, j)),
                pl.BlockSpec((None, ch, tl), lambda bi, j: (bi, 0, j)),
            ),
        ),
        compiler_params=pltpu.CompilerParams(
            dimension_semantics=("parallel", "parallel"),
            vmem_limit_bytes=32 * 1024 * 1024,
        ),
        cost_estimate=pl.CostEstimate(
            flops=flops,
            transcendentals=transcendentals,
            bytes_accessed=bytes_accessed,
        ),
    )(x_r, h_r, c_r, wx, wh, b)

    hidden_next = hn_r.reshape(n, ch, hh, ww)
    cell_next = cn_r.reshape(n, ch, hh, ww)
    return hidden_next, (hidden_next, cell_next)


def _reference(x_nchw, weight, bias=None, state=None):
    # pure-JAX reference (1x1 conv == channel matmul), for sanity checking
    n, cin, hh, ww = x_nchw.shape
    four_ch = weight.shape[0]
    ch = four_ch // 4
    if state is None:
        hidden = jnp.zeros((n, ch, hh, ww), dtype=x_nchw.dtype)
        cell = jnp.zeros((n, ch, hh, ww), dtype=x_nchw.dtype)
    else:
        hidden, cell = state
    combined = jnp.concatenate([x_nchw, hidden], axis=1)          # (N, Cin+Ch, H, W)
    gates = jnp.einsum("nchw,oc->nohw", combined, weight)         # (N, 4Ch, H, W)
    if bias is not None:
        gates = gates + bias.reshape(1, four_ch, 1, 1)
    i_g = jax.nn.sigmoid(gates[:, 0 * ch:1 * ch])
    f_g = jax.nn.sigmoid(gates[:, 1 * ch:2 * ch])
    o_g = jax.nn.sigmoid(gates[:, 2 * ch:3 * ch])
    g_g = jnp.tanh(gates[:, 3 * ch:4 * ch])
    c_next = f_g * cell + i_g * g_g
    h_next = o_g * jnp.tanh(c_next)
    return h_next, (h_next, c_next)


if __name__ == "__main__":
    key = jax.random.PRNGKey(0)
    k_x, k_w, k_h, k_c = jax.random.split(key, 4)

    batch, in_channels, hidden_channels, spatial = 2, 4, 32, 16

    x = jax.random.normal(k_x, (batch, in_channels, spatial, spatial), dtype=jnp.float32)
    # 1x1 conv weight of nn.Conv2d(in+hidden, 4*hidden, kernel_size=1, bias=False),
    # squeezed from (4*hidden, in+hidden, 1, 1) -> (4*hidden, in+hidden)
    weight = 0.1 * jax.random.normal(
        k_w, (4 * hidden_channels, in_channels + hidden_channels), dtype=jnp.float32
    )
    # a nontrivial initial state
    h0 = jax.random.normal(k_h, (batch, hidden_channels, spatial, spatial), dtype=jnp.float32)
    c0 = jax.random.normal(k_c, (batch, hidden_channels, spatial, spatial), dtype=jnp.float32)

    # pure-JAX reference (computed first, independent of the kernel call)
    h_ref, (_, c_ref) = _reference(x, weight, state=(h0, c0))

    h_next, (h_next2, c_next) = conv_lstm_step(x, weight, state=(h0, c0))
    jax.block_until_ready(h_next)
    jax.block_until_ready(c_next)

    assert jnp.allclose(h_next, h_ref, atol=1e-5, rtol=1e-5)
    assert jnp.allclose(c_next, c_ref, atol=1e-5, rtol=1e-5)

    # Also exercise the default (state=None) path of the module.
    h_ref0, (_, c_ref0) = _reference(x, weight, state=None)
    h_n0, (_, c_n0) = conv_lstm_step(x, weight, state=None)
    jax.block_until_ready(h_n0)
    assert jnp.allclose(h_n0, h_ref0, atol=1e-5, rtol=1e-5)
    assert jnp.allclose(c_n0, c_ref0, atol=1e-5, rtol=1e-5)

    print("KERNEL_OK")
</pallas_src>

<mosaic_0001>
module attributes {stable_mosaic.version = 11 : i64} {
  func.func @_convlstm_kernel(%arg0: i32, %arg1: i32, %arg2: memref<1x4x256xf32, #tpu.memory_space<vmem>>, %arg3: memref<1x32x256xf32, #tpu.memory_space<vmem>>, %arg4: memref<1x32x256xf32, #tpu.memory_space<vmem>>, %arg5: memref<128x4xf32, #tpu.memory_space<vmem>>, %arg6: memref<128x32xf32, #tpu.memory_space<vmem>>, %arg7: memref<128x1xf32, #tpu.memory_space<vmem>>, %arg8: memref<1x32x256xf32, #tpu.memory_space<vmem>>, %arg9: memref<1x32x256xf32, #tpu.memory_space<vmem>>) attributes {dimension_semantics = [#tpu.dimension_semantics<parallel>, #tpu.dimension_semantics<parallel>], iteration_bounds = array<i64: 2, 1>, scalar_prefetch = 0 : i64, scratch_operands = 0 : i64, tpu.core_type = #tpu.core_type<tc>, window_params = [{transform_indices = @transform_0, window_bounds = array<i64: 1, 4, 256>}, {transform_indices = @transform_1, window_bounds = array<i64: 1, 32, 256>}, {transform_indices = @transform_2, window_bounds = array<i64: 1, 32, 256>}, {pipeline_mode = #tpu.pipeline_mode<synchronous>, transform_indices = @transform_3, window_bounds = array<i64: 128, 4>}, {pipeline_mode = #tpu.pipeline_mode<synchronous>, transform_indices = @transform_4, window_bounds = array<i64: 128, 32>}, {pipeline_mode = #tpu.pipeline_mode<synchronous>, transform_indices = @transform_5, window_bounds = array<i64: 128, 1>}, {transform_indices = @transform_6, window_bounds = array<i64: 1, 32, 256>}, {transform_indices = @transform_7, window_bounds = array<i64: 1, 32, 256>}]} {
    %c0 = arith.constant 0 : index
    %c0_0 = arith.constant 0 : index
    %0 = vector.load %arg5[%c0, %c0_0] : memref<128x4xf32, #tpu.memory_space<vmem>>, vector<128x4xf32>
    %c0_1 = arith.constant 0 : index
    %c0_2 = arith.constant 0 : index
    %c0_3 = arith.constant 0 : index
    %1 = vector.load %arg2[%c0_1, %c0_2, %c0_3] : memref<1x4x256xf32, #tpu.memory_space<vmem>>, vector<1x4x256xf32>
    %2 = vector.shape_cast %1 : vector<1x4x256xf32> to vector<4x256xf32>
    %cst = arith.constant dense<0.000000e+00> : vector<128x256xf32>
    %3 = tpu.matmul %0, %2, %cst {dimension_numbers = #tpu.dot_dimension_numbers<[1], [0], [0], [1], [0, 0, 1, 1], [], []>} : vector<128x4xf32>, vector<4x256xf32>, vector<128x256xf32> -> vector<128x256xf32>
    %c0_4 = arith.constant 0 : index
    %c0_5 = arith.constant 0 : index
    %4 = vector.load %arg6[%c0_4, %c0_5] : memref<128x32xf32, #tpu.memory_space<vmem>>, vector<128x32xf32>
    %c0_6 = arith.constant 0 : index
    %c0_7 = arith.constant 0 : index
    %c0_8 = arith.constant 0 : index
    %5 = vector.load %arg3[%c0_6, %c0_7, %c0_8] : memref<1x32x256xf32, #tpu.memory_space<vmem>>, vector<1x32x256xf32>
    %6 = vector.shape_cast %5 : vector<1x32x256xf32> to vector<32x256xf32>
    %cst_9 = arith.constant dense<0.000000e+00> : vector<128x256xf32>
    %7 = tpu.matmul %4, %6, %cst_9 {dimension_numbers = #tpu.dot_dimension_numbers<[1], [0], [0], [1], [0, 0, 1, 1], [], []>} : vector<128x32xf32>, vector<32x256xf32>, vector<128x256xf32> -> vector<128x256xf32>
    %8 = arith.addf %3, %7 : vector<128x256xf32>
    %c0_10 = arith.constant 0 : index
    %c0_11 = arith.constant 0 : index
    %9 = vector.load %arg7[%c0_10, %c0_11] : memref<128x1xf32, #tpu.memory_space<vmem>>, vector<128x1xf32>
    %10 = vector.broadcast %9 : vector<128x1xf32> to vector<128x256xf32>
    %11 = arith.addf %8, %10 : vector<128x256xf32>
    %12 = vector.extract_strided_slice %11 {offsets = [0, 0], sizes = [32, 256], strides = [1, 1]} : vector<128x256xf32> to vector<32x256xf32>
    %13 = arith.negf %12 : vector<32x256xf32>
    %14 = math.exp %13 : vector<32x256xf32>
    %cst_12 = arith.constant 1.000000e+00 : f32
    %15 = vector.broadcast %cst_12 : f32 to vector<32x256xf32>
    %16 = arith.addf %15, %14 : vector<32x256xf32>
    %17 = arith.divf %15, %16 : vector<32x256xf32>
    %18 = vector.extract_strided_slice %11 {offsets = [32, 0], sizes = [32, 256], strides = [1, 1]} : vector<128x256xf32> to vector<32x256xf32>
    %19 = arith.negf %18 : vector<32x256xf32>
    %20 = math.exp %19 : vector<32x256xf32>
    %cst_13 = arith.constant 1.000000e+00 : f32
    %21 = vector.broadcast %cst_13 : f32 to vector<32x256xf32>
    %22 = arith.addf %21, %20 : vector<32x256xf32>
    %23 = arith.divf %21, %22 : vector<32x256xf32>
    %24 = vector.extract_strided_slice %11 {offsets = [64, 0], sizes = [32, 256], strides = [1, 1]} : vector<128x256xf32> to vector<32x256xf32>
    %25 = arith.negf %24 : vector<32x256xf32>
    %26 = math.exp %25 : vector<32x256xf32>
    %cst_14 = arith.constant 1.000000e+00 : f32
    %27 = vector.broadcast %cst_14 : f32 to vector<32x256xf32>
    %28 = arith.addf %27, %26 : vector<32x256xf32>
    %29 = arith.divf %27, %28 : vector<32x256xf32>
    %30 = vector.extract_strided_slice %11 {offsets = [96, 0], sizes = [32, 256], strides = [1, 1]} : vector<128x256xf32> to vector<32x256xf32>
    %31 = math.tanh %30 : vector<32x256xf32>
    %c0_15 = arith.constant 0 : index
    %c0_16 = arith.constant 0 : index
    %c0_17 = arith.constant 0 : index
    %32 = vector.load %arg4[%c0_15, %c0_16, %c0_17] : memref<1x32x256xf32, #tpu.memory_space<vmem>>, vector<1x32x256xf32>
    %33 = vector.shape_cast %32 : vector<1x32x256xf32> to vector<32x256xf32>
    %34 = arith.mulf %23, %33 : vector<32x256xf32>
    %35 = arith.mulf %17, %31 : vector<32x256xf32>
    %36 = arith.addf %34, %35 : vector<32x256xf32>
    %37 = math.tanh %36 : vector<32x256xf32>
    %38 = arith.mulf %29, %37 : vector<32x256xf32>
    %c0_18 = arith.constant 0 : index
    %c0_19 = arith.constant 0 : index
    %c0_20 = arith.constant 0 : index
    %39 = vector.load %arg8[%c0_18, %c0_19, %c0_20] : memref<1x32x256xf32, #tpu.memory_space<vmem>>, vector<1x32x256xf32>
    %40 = vector.shape_cast %39 : vector<1x32x256xf32> to vector<32x256xf32>
    %41 = vector.shape_cast %38 : vector<32x256xf32> to vector<1x32x256xf32>
    tpu.vector_store %arg8[%c0_18, %c0_19, %c0_20], %41 {strides = array<i32>} : memref<1x32x256xf32, #tpu.memory_space<vmem>>, vector<1x32x256xf32>,
    %c0_21 = arith.constant 0 : index
    %c0_22 = arith.constant 0 : index
    %c0_23 = arith.constant 0 : index
    %42 = vector.load %arg9[%c0_21, %c0_22, %c0_23] : memref<1x32x256xf32, #tpu.memory_space<vmem>>, vector<1x32x256xf32>
    %43 = vector.shape_cast %42 : vector<1x32x256xf32> to vector<32x256xf32>
    %44 = vector.shape_cast %36 : vector<32x256xf32> to vector<1x32x256xf32>
    tpu.vector_store %arg9[%c0_21, %c0_22, %c0_23], %44 {strides = array<i32>} : memref<1x32x256xf32, #tpu.memory_space<vmem>>, vector<1x32x256xf32>,
    return
  }
  func.func @transform_0(%arg0: i32, %arg1: i32) -> (i32, i32, i32) {
    %c0_i32 = arith.constant 0 : i32
    %c0_i32_0 = arith.constant 0 : i32
    return %arg0, %c0_i32, %arg1 : i32, i32, i32
  }
  func.func @transform_1(%arg0: i32, %arg1: i32) -> (i32, i32, i32) {
    %c0_i32 = arith.constant 0 : i32
    %c0_i32_0 = arith.constant 0 : i32
    return %arg0, %c0_i32, %arg1 : i32, i32, i32
  }
  func.func @transform_2(%arg0: i32, %arg1: i32) -> (i32, i32, i32) {
    %c0_i32 = arith.constant 0 : i32
    %c0_i32_0 = arith.constant 0 : i32
    return %arg0, %c0_i32, %arg1 : i32, i32, i32
  }
  func.func @transform_3(%arg0: i32, %arg1: i32) -> (i32, i32) {
    %c0_i32 = arith.constant 0 : i32
    %c0_i32_0 = arith.constant 0 : i32
    %c0_i32_1 = arith.constant 0 : i32
    return %c0_i32, %c0_i32_0 : i32, i32
  }
  func.func @transform_4(%arg0: i32, %arg1: i32) -> (i32, i32) {
    %c0_i32 = arith.constant 0 : i32
    %c0_i32_0 = arith.constant 0 : i32
    %c0_i32_1 = arith.constant 0 : i32
    return %c0_i32, %c0_i32_0 : i32, i32
  }
  func.func @transform_5(%arg0: i32, %arg1: i32) -> (i32, i32) {
    %c0_i32 = arith.constant 0 : i32
    %c0_i32_0 = arith.constant 0 : i32
    %c0_i32_1 = arith.constant 0 : i32
    return %c0_i32, %c0_i32_0 : i32, i32
  }
  func.func @transform_6(%arg0: i32, %arg1: i32) -> (i32, i32, i32) {
    %c0_i32 = arith.constant 0 : i32
    %c0_i32_0 = arith.constant 0 : i32
    return %arg0, %c0_i32, %arg1 : i32, i32, i32
  }
  func.func @transform_7(%arg0: i32, %arg1: i32) -> (i32, i32, i32) {
    %c0_i32 = arith.constant 0 : i32
    %c0_i32_0 = arith.constant 0 : i32
    return %arg0, %c0_i32, %arg1 : i32, i32, i32
  }
}

</mosaic_0001>

<bundles_post_ra>
// kernel: tpu_custom_call.1
= control target key start
LH: loop header
LB: loop body
LE: loop exit
PB: predicated region body
PF: predicated region fallthrough
CT: control target
= control target key end

     0   :  { %13 = vsyncpa [#allocation3], 0  ;;  %s2337_s0 = inlined_call_operand.vmem [shape: f32[2,4,256], index: 0, kind: input, shape index: {}]   ;;  %s2338_s1 = inlined_call_operand.vmem [shape: f32[2,32,256], index: 1, kind: input, shape index: {}]   ;;  %s2339_s2 = inlined_call_operand.vmem [shape: f32[2,32,256], index: 2, kind: input, shape index: {}]   ;;  %s2340_s3 = inlined_call_operand.vmem [shape: f32[128,4], index: 3, kind: input, shape index: {}]   ;;  %s2341_s4 = inlined_call_operand.vmem [shape: f32[128,32], index: 4, kind: input, shape index: {}]   ;;  %s2342_s5 = inlined_call_operand.vmem [shape: f32[128,1], index: 5, kind: input, shape index: {}]   ;;  %s2343_s6 = inlined_call_operand.hbm [shape: f32[2,32,256], index: 6, kind: output, shape index: {0}]   ;;  %s2344_s7 = inlined_call_operand.hbm [shape: f32[2,32,256], index: 7, kind: output, shape index: {1}]  }
   0x1   :  { %15 = vsyncpa [#allocation3 + $0x1], 0 }
   0x2   :  { %16 = vsyncpa [#allocation5], 0 }
   0x3   :  { %18 = vsyncpa [#allocation5 + $0x1], 0  ;;  %s1872_s24 = smov 0   ;;  %s1874_s25 = smov 0  }
   0x4   :  { %s1876_s26 = smov 0   ;;  %s1878_s27 = smov 0  }
   0x5   :  { %s1880_s28 = smov 0   ;;  %s1882_s29 = smov 0  }
   0x6 LB: > { %s1395_s30 = sadd.s32 4294967295, %s1824_s29   ;;  %s1396_s8 = sadd.s32 4294967294, %s1824_s29   ;;  %s1824_s29 = sphi %s1882_s29, %s24_s29   ;;  %s1820_s28 = sphi %s1880_s28, %s2353_s28   ;;  %s1816_s27 = sphi %s1878_s27, %s2352_s27   ;;  %s1812_s26 = sphi %s1876_s26, %s2351_s26   ;;  %s1808_s25 = sphi %s1874_s25, %s2350_s25   ;;  %s1804_s24 = sphi %s1872_s24, %s2349_s24  }
   0x7   : > { %s36_s9 = sadd.s32 1, %s1820_s28  ;;  %s192_s10 = sadd.s32 1, %s1812_s26 }
   0x8   : > { %p38_p0 = scmp.ge.s32.totalorder %s36_s9, 2  ;;  %p202_p1 = scmp.ne.s32.totalorder %s1812_s26, %s1808_s25 }
   0x9   : > { %p203_p2 = scmp.eq.s32.totalorder %s1395_s30, 1  ;;  %p208_p3 = scmp.ne.s32.totalorder %s1808_s25, %s1804_s24 }
   0xa   : > { %s2355_s9 = smov (%p38_p0, %s36_s9), 0  ;;  %p209_p5 = scmp.eq.s32.totalorder %s1396_s8, 1 }
   0xb   : > { %p1912_p4 = por %p203_p2, %p202_p1  ;;  %s187_s12 = ssub.s32 %s1820_s28, %s2355_s9 }
   0xc   : > { %p1399_p6 = scmp.ge.s32.totalorder %s1824_s29, 1  ;;  %p190_p7 = scmp.eq.s32.totalorder %s187_s12, 0 }
   0xd   : > { %p1919_p8 = por %p209_p5, %p208_p3  ;;  %p303_p9 = scmp.lt.s32.totalorder %s1824_s29, 3 }
   0xe   : > { %s1925_s14 = scalar_select %p190_p7, %s1812_s26, %s192_s10  }
   0xf   : > { %p304_p10 = pnand %p1399_p6, %p303_p9 }
  0x10   : > { %p363_p11 = scmp.lt.s32.totalorder (!%p304_p10), %s1816_s27, 1  ;;  %v1826_v0 = vmov (!%p304_p10), 0.0   ;;  %v1827_v1 = vmov (!%p304_p10), 0   ;;  %vm696_vm0 = vcmask (!%p304_p10), 1043456   ;;  %v394_v16 = vld [vmem:[%s2340_s3] sm:$0xff] (!%p304_p10)  ;;  %vm647_vm1 = vcmask (!%p304_p10), 31744  }
  0x11   : > { %307 = sbr.rel (%p304_p10) target bundleno = 375 (0x177), region = 44  ;;  %765 = vmatprep.mubr.f32.mxu0 (!%p304_p10), %v1826_v0  ;;  %548 = vmatprep.mubr.f32.mxu1 (!%p304_p10), %v1826_v0  ;;  %v411_v17 = vld [vmem:[%s2341_s4] sm:$0xff] (!%p304_p10)  ;;  %vm435_vm2 = vcmask (!%p304_p10), 261120   ;;  %v395_v18 = vld [vmem:[%s2340_s3 + $0x8] sm:$0xff] (!%p304_p10)  ;;  %v864_v20 = vld [vmem:[%s2342_s5 + $0x10] sm:$0xff] (!%p304_p10)  ;;  %s2345_s8 = sshll.u32 (!%p304_p10), %s1816_s27, 10 }
  0x12   : > { %1583 = vset.pattern.permute.xlu0 (!%p304_p10), %v1827_v1  ;;  %1584 = vset.pattern.permute.xlu1 (!%p304_p10), %v1827_v1  ;;  %v862_v19 = vld [vmem:[%s2342_s5] sm:$0xff] (!%p304_p10)  ;;  %v863_v21 = vld [vmem:[%s2342_s5 + $0x8] sm:$0xff] (!%p304_p10)  ;;  %v865_v22 = vld [vmem:[%s2342_s5 + $0x18] sm:$0xff] (!%p304_p10)  ;;  %s2233_s18 = scalar_lea.hbm (!%p304_p10), %s2344_s7, %s2345_s8  ;;  %s1828_s22 = smov (!%p304_p10), [#allocation4]  }
  0x13   : > { %880 = vperm.xlu0 (!%p304_p10), %1583, %v862_v19   ;;  %890 = vperm.xlu1 (!%p304_p10), %1584, %v864_v20   ;;  %v412_v23 = vld [vmem:[%s2341_s4 + $0x8] sm:$0xff] (!%p304_p10)  ;;  %v396_v24 = vld [vmem:[%s2340_s3 + $0x10] sm:$0xff] (!%p304_p10)  ;;  %v866_v26 = vld [vmem:[%s2342_s5 + $0x20] sm:$0xff] (!%p304_p10) }
  0x14   : > { %v867_v25 = vld [vmem:[%s2342_s5 + $0x28] sm:$0xff] (!%p304_p10)  ;;  %v413_v27 = vld [vmem:[%s2341_s4 + $0x10] sm:$0xff] (!%p304_p10)  ;;  %v397_v28 = vld [vmem:[%s2340_s3 + $0x18] sm:$0xff] (!%p304_p10) }
  0x15   : > { %v869_v29 = vld [vmem:[%s2342_s5 + $0x38] sm:$0xff] (!%p304_p10)  ;;  %v868_v30 = vld [vmem:[%s2342_s5 + $0x30] sm:$0xff] (!%p304_p10)  ;;  %v398_v32 = vld [vmem:[%s2340_s3 + $0x20] sm:$0xff] (!%p304_p10) }
  0x16   : > { %v414_v31 = vld [vmem:[%s2341_s4 + $0x18] sm:$0xff] (!%p304_p10)  ;;  %v871_v33 = vld [vmem:[%s2342_s5 + $0x48] sm:$0xff] (!%p304_p10)  ;;  %v870_v34 = vld [vmem:[%s2342_s5 + $0x40] sm:$0xff] (!%p304_p10) }
  0x17   : > { %885 = vperm.xlu0 (!%p304_p10), %1583, %v863_v21   ;;  %895 = vperm.xlu1 (!%p304_p10), %1584, %v865_v22   ;;  %v415_v35 = vld [vmem:[%s2341_s4 + $0x20] sm:$0xff] (!%p304_p10)  ;;  %v399_v36 = vld [vmem:[%s2340_s3 + $0x28] sm:$0xff] (!%p304_p10)  ;;  %v873_v37 = vld [vmem:[%s2342_s5 + $0x58] sm:$0xff] (!%p304_p10) }
  0x18   : > { %s1931_s15 = scalar_select %p363_p11, %s1816_s27, 1  ;;  %v872_v38 = vld [vmem:[%s2342_s5 + $0x50] sm:$0xff]  ;;  %v416_v39 = vld [vmem:[%s2341_s4 + $0x28] sm:$0xff]  ;;  %v874_v42 = vld [vmem:[%s2342_s5 + $0x60] sm:$0xff] }
  0x19   : > { %v400_v40 = vld [vmem:[%s2340_s3 + $0x30] sm:$0xff]  ;;  %v875_v41 = vld [vmem:[%s2342_s5 + $0x68] sm:$0xff]  ;;  %v401_v44 = vld [vmem:[%s2340_s3 + $0x38] sm:$0xff] }
  0x1a   : > { %s1475_s16 = sshll.u32 %s1931_s15, 6  ;;  %s1474_s17 = sshll.u32 %s1931_s15, 3  ;;  %v417_v43 = vld [vmem:[%s2341_s4 + $0x30] sm:$0xff]  ;;  %v877_v45 = vld [vmem:[%s2342_s5 + $0x78] sm:$0xff]  ;;  %v402_v48 = vld [vmem:[%s2340_s3 + $0x40] sm:$0xff] }
  0x1b   : > { %s380_s20 = scalar_lea.vmem %s2338_s1, %s1475_s16  ;;  %s370_s23 = scalar_lea.vmem %s2337_s0, %s1474_s17  ;;  %905 = vperm.xlu1 %1584, %v867_v25   ;;  %900 = vperm.xlu0 %1583, %v866_v26   ;;  %v876_v46 = vld [vmem:[%s2342_s5 + $0x70] sm:$0xff]  ;;  %v418_v47 = vld [vmem:[%s2341_s4 + $0x38] sm:$0xff]  ;;  %v419_v49 = vld [vmem:[%s2341_s4 + $0x40] sm:$0xff] }
  0x1c   : > { %v428_v2 = vld [vmem:[%s380_s20 + $0x8] sm:$0xff]  ;;  %v430_v3 = vld [vmem:[%s380_s20 + $0x18] sm:$0xff]  ;;  %v427_v4 = vld [vmem:[%s380_s20] sm:$0xff]  ;;  %s2198_s15 = sand.u32 1, %s1808_s25  }
  0x1d   : > { %v1479_v5 = vpack.c.bf16 %v430_v3, %v428_v2  ;;  %v429_v6 = vld [vmem:[%s380_s20 + $0x10] sm:$0xff]  ;;  %v432_v7 = vld [vmem:[%s380_s20 + $0x28] sm:$0xff]  ;;  %v434_v8 = vld [vmem:[%s380_s20 + $0x38] sm:$0xff] }
  0x1e   : > { %v1481_v9 = vpack.c.bf16 %v429_v6, %v427_v4  ;;  %v1483_v10 = vpack.c.bf16 %v434_v8, %v432_v7  ;;  %v431_v11 = vld [vmem:[%s380_s20 + $0x20] sm:$0xff]  ;;  %v433_v12 = vld [vmem:[%s380_s20 + $0x30] sm:$0xff]  ;;  %v403_v50 = vld [vmem:[%s2340_s3 + $0x48] sm:$0xff]  ;;  %s1212_s20 = scalar_lea.sflag [#allocation5], %s2198_s15 }
  0x1f   : > { %v410_v13 = vld [vmem:[%s370_s23] sm:$0xff]  ;;  %1480 = vmatprep.subr.bf16.mxu1 %v1479_v5  ;;  %v1485_v15 = vpack.c.bf16 %v433_v12, %v431_v11  ;;  %915 = vperm.xlu1 %1584, %v869_v29   ;;  %v420_v51 = vld [vmem:[%s2341_s4 + $0x48] sm:$0xff]  ;;  %v404_v52 = vld [vmem:[%s2340_s3 + $0x50] sm:$0xff]  ;;  %s2156_s23 = scalar_lea.vmem %s2339_s2, %s1475_s16  ;;  %s1400_s16 = sshll.u32 %s2198_s15, 6 }
  0x20   : > { %v646_v14 = vcombine.high %v410_v13, %v410_v13  ;;  %1482 = vmatpush1.bf16.msra.mxu1 %v1481_v9  ;;  %910 = vperm.xlu0 %1583, %v868_v30   ;;  %v421_v53 = vld [vmem:[%s2341_s4 + $0x50] sm:$0xff]  ;;  %v405_v54 = vld [vmem:[%s2340_s3 + $0x58] sm:$0xff]  ;;  %v406_v56 = vld [vmem:[%s2340_s3 + $0x60] sm:$0xff]  ;;  %s2208_s30 = scalar_lea.vmem [#allocation4], %s1400_s16  ;;  %s2240_s19 = scalar_lea.vmem [#allocation2], %s1400_s16 }
  0x21   : > { %1484 = vmatprep.subr.bf16.mxu1 %v1483_v10  ;;  %v422_v55 = vld [vmem:[%s2341_s4 + $0x58] sm:$0xff]  ;;  %v423_v57 = vld [vmem:[%s2341_s4 + $0x60] sm:$0xff]  ;;  %v407_v58 = vld [vmem:[%s2340_s3 + $0x68] sm:$0xff]  ;;  %s1245_s10 = sshll.u32 %s2208_s30, 4  ;;  %s2235_s10 = int_to_ptr.vmem [resolvable:$true] %s1245_s10 }
  0x22   : > { %1424 = vmatprep.subr.msk.mxu0 %vm696_vm0, %v646_v14  ;;  %v424_v59 = vld [vmem:[%s2341_s4 + $0x68] sm:$0xff]  ;;  %v408_v60 = vld [vmem:[%s2340_s3 + $0x70] sm:$0xff]  ;;  %v409_v62 = vld [vmem:[%s2340_s3 + $0x78] sm:$0xff]  ;;  %s1714_s21 = scalar_lea.vmem %s2235_s10, 1024 }
  0x23   : > { %1425 = vmatpush1.msk.msra.mxu0 %vm696_vm0, %v410_v13  ;;  %925 = vperm.xlu1 %1584, %v871_v33   ;;  %v425_v61 = vld [vmem:[%s2341_s4 + $0x70] sm:$0xff]  ;;  %v426_v63 = vld [vmem:[%s2341_s4 + $0x78] sm:$0xff]  ;;  %p1715_p12 = scmp.ne.s32.totalorder %s2235_s10, %s1714_s21 }
  0x24   : > { %1426 = vmatmul.mubr.msk.f32.vlgmr.msra.gmra.mrb[0].mxu0 %vm647_vm1, %v394_v16  ;;  %1486 = vmatpush1.bf16.msra.mxu1 %v1485_v15 }
  0x25   : > { %771 = vmatprep.mubr.f32.mxu0 %v1826_v0  ;;  %920 = vperm.xlu0 %1583, %v870_v34   ;;  %p1716_p13 = pnand %p1715_p12, %p1912_p4 }
  0x27   : > { %1408 = vmatmul.mubr.msk.f32.vlgmr.msra.gmra.mrb[0].mxu1 %vm435_vm2, %v411_v17  ;;  %935 = vperm.xlu1 %1584, %v873_v37   ;;  %p1717_p0 = pneg %p1716_p13 }
  0x28   : > { %1427 = vmatmul.mubr.msk.f32.gmra.mrb[2].mxu0 %vm647_vm1, %v395_v18  ;;  %554 = vmatprep.mubr.f32.mxu1 %v1826_v0 }
  0x29   : > { %777 = vmatprep.mubr.f32.mxu0 %v1826_v0  ;;  %930 = vperm.xlu0 %1583, %v872_v38  }
  0x2b   : > { %1409 = vmatmul.mubr.msk.f32.gmra.mrb[2].mxu1 %vm435_vm2, %v412_v23  ;;  %945 = vperm.xlu1 %1584, %v875_v41  }
  0x2c   : > { %1428 = vmatmul.mubr.msk.f32.gmra.mrb[4].mxu0 %vm647_vm1, %v396_v24  ;;  %560 = vmatprep.mubr.f32.mxu1 %v1826_v0 }
  0x2d   : > { %783 = vmatprep.mubr.f32.mxu0 %v1826_v0  ;;  %940 = vperm.xlu0 %1583, %v874_v42  }
  0x2f   : > { %1410 = vmatmul.mubr.msk.f32.gmra.mrb[4].mxu1 %vm435_vm2, %v413_v27  ;;  %955 = vperm.xlu1 %1584, %v877_v45  }
  0x30   : > { %1429 = vmatmul.mubr.msk.f32.gmra.mrb[6].mxu0 %vm647_vm1, %v397_v28  ;;  %566 = vmatprep.mubr.f32.mxu1 %v1826_v0 }
  0x31   : > { %789 = vmatprep.mubr.f32.mxu0 %v1826_v0  ;;  %950 = vperm.xlu0 %1583, %v876_v46  }
  0x33   : > { %1411 = vmatmul.mubr.msk.f32.gmra.mrb[6].mxu1 %vm435_vm2, %v414_v31 }
  0x34   : > { %1430 = vmatmul.mubr.msk.f32.gmra.mrb[8].mxu0 %vm647_vm1, %v398_v32  ;;  %572 = vmatprep.mubr.f32.mxu1 %v1826_v0 }
  0x35   : > { %795 = vmatprep.mubr.f32.mxu0 %v1826_v0 }
  0x37   : > { %1412 = vmatmul.mubr.msk.f32.gmra.mrb[8].mxu1 %vm435_vm2, %v415_v35 }
  0x38   : > { %1431 = vmatmul.mubr.msk.f32.gmra.mrb[10].mxu0 %vm647_vm1, %v399_v36  ;;  %578 = vmatprep.mubr.f32.mxu1 %v1826_v0 }
  0x39   : > { %801 = vmatprep.mubr.f32.mxu0 %v1826_v0 }
  0x3b   : > { %1413 = vmatmul.mubr.msk.f32.gmra.mrb[10].mxu1 %vm435_vm2, %v416_v39 }
  0x3c   : > { %1432 = vmatmul.mubr.msk.f32.gmra.mrb[12].mxu0 %vm647_vm1, %v400_v40  ;;  %584 = vmatprep.mubr.f32.mxu1 %v1826_v0 }
  0x3d   : > { %807 = vmatprep.mubr.f32.mxu0 %v1826_v0 }
  0x3f   : > { %1414 = vmatmul.mubr.msk.f32.gmra.mrb[12].mxu1 %vm435_vm2, %v417_v43 }
  0x40   : > { %1433 = vmatmul.mubr.msk.f32.gmra.mrb[14].mxu0 %vm647_vm1, %v401_v44  ;;  %590 = vmatprep.mubr.f32.mxu1 %v1826_v0 }
  0x41   : > { %813 = vmatprep.mubr.f32.mxu0 %v1826_v0 }
  0x43   : > { %1415 = vmatmul.mubr.msk.f32.gmra.mrb[14].mxu1 %vm435_vm2, %v418_v47 }
  0x44   : > { %1434 = vmatmul.mubr.msk.f32.gmra.mrb[16].mxu0 %vm647_vm1, %v402_v48  ;;  %596 = vmatprep.mubr.f32.mxu1 %v1826_v0 }
  0x45   : > { %819 = vmatprep.mubr.f32.mxu0 %v1826_v0 }
  0x47   : > { %1416 = vmatmul.mubr.msk.f32.gmra.mrb[16].mxu1 %vm435_vm2, %v419_v49 }
  0x48   : > { %1435 = vmatmul.mubr.msk.f32.gmra.mrb[18].mxu0 %vm647_vm1, %v403_v50  ;;  %602 = vmatprep.mubr.f32.mxu1 %v1826_v0 }
  0x49   : > { %825 = vmatprep.mubr.f32.mxu0 %v1826_v0 }
  0x4b   : > { %1417 = vmatmul.mubr.msk.f32.gmra.mrb[18].mxu1 %vm435_vm2, %v420_v51 }
  0x4c   : > { %1436 = vmatmul.mubr.msk.f32.gmra.mrb[20].mxu0 %vm647_vm1, %v404_v52  ;;  %608 = vmatprep.mubr.f32.mxu1 %v1826_v0 }
  0x4d   : > { %831 = vmatprep.mubr.f32.mxu0 %v1826_v0 }
  0x4f   : > { %1418 = vmatmul.mubr.msk.f32.gmra.mrb[20].mxu1 %vm435_vm2, %v421_v53 }
  0x50   : > { %1437 = vmatmul.mubr.msk.f32.gmra.mrb[22].mxu0 %vm647_vm1, %v405_v54  ;;  %614 = vmatprep.mubr.f32.mxu1 %v1826_v0 }
  0x51   : > { %837 = vmatprep.mubr.f32.mxu0 %v1826_v0 }
  0x53   : > { %1419 = vmatmul.mubr.msk.f32.gmra.mrb[22].mxu1 %vm435_vm2, %v422_v55 }
  0x54   : > { %1438 = vmatmul.mubr.msk.f32.gmra.mrb[24].mxu0 %vm647_vm1, %v406_v56  ;;  %620 = vmatprep.mubr.f32.mxu1 %v1826_v0 }
  0x55   : > { %843 = vmatprep.mubr.f32.mxu0 %v1826_v0 }
  0x57   : > { %1420 = vmatmul.mubr.msk.f32.gmra.mrb[24].mxu1 %vm435_vm2, %v423_v57 }
  0x58   : > { %1439 = vmatmul.mubr.msk.f32.gmra.mrb[26].mxu0 %vm647_vm1, %v407_v58  ;;  %626 = vmatprep.mubr.f32.mxu1 %v1826_v0 }
  0x59   : > { %849 = vmatprep.mubr.f32.mxu0 %v1826_v0 }
  0x5b   : > { %1421 = vmatmul.mubr.msk.f32.gmra.mrb[26].mxu1 %vm435_vm2, %v424_v59 }
  0x5c   : > { %1440 = vmatmul.mubr.msk.f32.gmra.mrb[28].mxu0 %vm647_vm1, %v408_v60  ;;  %632 = vmatprep.mubr.f32.mxu1 %v1826_v0 }
  0x5d   : > { %855 = vmatprep.mubr.f32.mxu0 %v1826_v0 }
  0x5f   : > { %1422 = vmatmul.mubr.msk.f32.gmra.mrb[28].mxu1 %vm435_vm2, %v425_v61 }
  0x60   : > { %1441 = vmatmul.mubr.msk.f32.gmra.mrb[30].mxu0 %vm647_vm1, %v409_v62  ;;  %638 = vmatprep.mubr.f32.mxu1 %v1826_v0 }
  0x63   : > { %1423 = vmatmul.mubr.msk.f32.gmra.mrb[30].mxu1 %vm435_vm2, %v426_v63 }
  0x92   : > { %v881_v3 = vpop.permute.xlu0 %880  ;;  %v891_v18 = vpop.permute.xlu1 %890 }
  0x96   : > { %v886_v17 = vpop.permute.xlu0 %885  ;;  %v896_v36 = vpop.permute.xlu1 %895 }
  0x9a   : > { %v901_v45 = vpop.permute.xlu0 %900  ;;  %v906_v59 = vpop.permute.xlu1 %905 }
  0xf7   : > { %v767_v1 = vpop.f32.mrb[0].mxu0 }
  0xf8   : > { %v769_v2 = vpop.f32.mrb[1].mxu0 }
  0xfa   : > { %v550_v4 = vpop.f32.mrb[0].mxu1 }
  0xfb   : > { %v773_v5 = vpop.f32.mrb[2].mxu0  ;;  %v768_v6 = vadd.f32 %v767_v1, %v550_v4  ;;  %v552_v7 = vpop.f32.mrb[1].mxu1 }
  0xfc   : > { %v775_v8 = vpop.f32.mrb[3].mxu0  ;;  %v770_v9 = vadd.f32 %v769_v2, %v552_v7 }
  0xfd   : > { %v958_v10 = vadd.f32 %v881_v3, %v768_v6 }
  0xfe   : > { %v556_v11 = vpop.f32.mrb[2].mxu1  ;;  %v959_v16 = vadd.f32 %v881_v3, %v770_v9 }
  0xff   : > { %v779_v12 = vpop.f32.mrb[4].mxu0  ;;  %v774_v13 = vadd.f32 %v773_v5, %v556_v11  ;;  %v558_v0 = vpop.f32.mrb[3].mxu1  ;;  %v1442_v19 = vmul.f32 -1.442695, %v958_v10 }
 0x100   : > { %v781_v14 = vpop.f32.mrb[5].mxu0  ;;  %v776_v15 = vadd.f32 %v775_v8, %v558_v0  ;;  %v1443_v27 = vmul.f32 -1.442695, %v959_v16  ;;  %v911_v11 = vpop.permute.xlu0 %910 }
 0x101   : > { %v960_v25 = vadd.f32 %v886_v17, %v774_v13  ;;  %1586 = vpow2.f32 %v1442_v19 }
 0x102   : > { %v562_v20 = vpop.f32.mrb[4].mxu1  ;;  %v961_v33 = vadd.f32 %v886_v17, %v776_v15  ;;  %1588 = vpow2.f32 %v1443_v27 }
 0x103   : > { %v785_v21 = vpop.f32.mrb[6].mxu0  ;;  %v780_v22 = vadd.f32 %v779_v12, %v562_v20  ;;  %v564_v23 = vpop.f32.mrb[5].mxu1  ;;  %v1444_v34 = vmul.f32 -1.442695, %v960_v25 }
 0x104   : > { %v787_v24 = vpop.f32.mrb[7].mxu0  ;;  %v782_v26 = vadd.f32 %v781_v14, %v564_v23  ;;  %v1445_v44 = vmul.f32 -1.442695, %v961_v33 }
 0x105   : > { %v962_v37 = vadd.f32 %v891_v18, %v780_v22  ;;  %1590 = vpow2.f32 %v1444_v34 }
 0x106   : > { %v568_v28 = vpop.f32.mrb[6].mxu1  ;;  %v963_v40 = vadd.f32 %v891_v18, %v782_v26  ;;  %1592 = vpow2.f32 %v1445_v44 }
 0x107   : > { %v791_v29 = vpop.f32.mrb[8].mxu0  ;;  %v786_v30 = vadd.f32 %v785_v21, %v568_v28  ;;  %v570_v31 = vpop.f32.mrb[7].mxu1  ;;  %v1446_v48 = vmul.f32 -1.442695, %v962_v37 }
 0x108   : > { %v793_v32 = vpop.f32.mrb[9].mxu0  ;;  %v788_v35 = vadd.f32 %v787_v24, %v570_v31  ;;  %v1447_v53 = vmul.f32 -1.442695, %v963_v40  ;;  %v916_v24 = vpop.permute.xlu1 %915 }
 0x109   : > { %v964_v49 = vadd.f32 %v896_v36, %v786_v30 }
 0x10a   : > { %v574_v38 = vpop.f32.mrb[8].mxu1  ;;  %v965_v10 = vadd.f32 %v896_v36, %v788_v35 }
 0x10b   : > { %v797_v39 = vpop.f32.mrb[10].mxu0  ;;  %v792_v41 = vadd.f32 %v791_v29, %v574_v38  ;;  %v576_v42 = vpop.f32.mrb[9].mxu1  ;;  %v1448_v63 = vmul.f32 -1.442695, %v964_v49 }
 0x10c   : > { %v799_v43 = vpop.f32.mrb[11].mxu0  ;;  %v794_v46 = vadd.f32 %v793_v32, %v576_v42  ;;  %v1587_v58 = vpop.eup %1586  ;;  %v1449_v23 = vmul.f32 -1.442695, %v965_v10 }
 0x10d   : > { %v966_v47 = vadd.f32 %v901_v45, %v792_v41  ;;  %v1589_v4 = vpop.eup %1588  ;;  %v1014_v5 = vadd.f32 1.0, %v1587_v58 }
 0x10e   : > { %v967_v50 = vadd.f32 %v901_v45, %v794_v46  ;;  %v580_v51 = vpop.f32.mrb[10].mxu1  ;;  %v1015_v15 = vadd.f32 1.0, %v1589_v4 }
 0x10f   : > { %v803_v52 = vpop.f32.mrb[12].mxu0  ;;  %v1450_v54 = vmul.f32 -1.442695, %v966_v47  ;;  %v798_v55 = vadd.f32 %v797_v39, %v580_v51  ;;  %v582_v56 = vpop.f32.mrb[11].mxu1 }
 0x110   : > { %v805_v57 = vpop.f32.mrb[13].mxu0  ;;  %v1451_v60 = vmul.f32 -1.442695, %v967_v50  ;;  %v800_v61 = vadd.f32 %v799_v43, %v582_v56  ;;  %v1591_v14 = vpop.eup %1590 }
 0x111   : > { %1594 = vpow2.f32 %v1450_v54  ;;  %v968_v62 = vadd.f32 %v906_v59, %v798_v55  ;;  %v1016_v27 = vadd.f32 1.0, %v1591_v14  ;;  %v1593_v29 = vpop.eup %1592  ;;  %v921_v43 = vpop.permute.xlu0 %920 }
 0x112   : > { %1596 = vpow2.f32 %v1446_v48  ;;  %v969_v1 = vadd.f32 %v906_v59, %v800_v61  ;;  %v586_v2 = vpop.f32.mrb[12].mxu1 }
 0x113   : > { %v809_v3 = vpop.f32.mrb[14].mxu0  ;;  %1598 = vpow2.f32 %v1447_v53  ;;  %v1452_v6 = vmul.f32 -1.442695, %v968_v62  ;;  %v804_v7 = vadd.f32 %v803_v52, %v586_v2  ;;  %v588_v8 = vpop.f32.mrb[13].mxu1  ;;  %v1017_v53 = vadd.f32 1.0, %v1593_v29 }
 0x114   : > { %v811_v9 = vpop.f32.mrb[15].mxu0  ;;  %1600 = vpow2.f32 %v1451_v60  ;;  %v1453_v12 = vmul.f32 -1.442695, %v969_v1  ;;  %v806_v13 = vadd.f32 %v805_v57, %v588_v8  ;;  %v926_v57 = vpop.permute.xlu1 %925 }
 0x115   : > { %1602 = vpow2.f32 %v1452_v6  ;;  %v970_v0 = vadd.f32 %v911_v11, %v804_v7  ;;  %v931_v10 = vpop.permute.xlu0 %930 }
 0x116   : > { %1604 = vpow2.f32 %v1448_v63  ;;  %v971_v16 = vadd.f32 %v911_v11, %v806_v13  ;;  %v592_v17 = vpop.f32.mrb[14].mxu1  ;;  %v1142_v13 = vld [vmem:[%s2156_s23] sm:$0xff] }
 0x117   : > { %v815_v18 = vpop.f32.mrb[16].mxu0  ;;  %1606 = vrcp.f32 %v1014_v5  ;;  %v1454_v19 = vmul.f32 -1.442695, %v970_v0  ;;  %v810_v20 = vadd.f32 %v809_v3, %v592_v17  ;;  %v594_v21 = vpop.f32.mrb[15].mxu1 }
 0x118   : > { %v817_v22 = vpop.f32.mrb[17].mxu0  ;;  %1608 = vpow2.f32 %v1453_v12  ;;  %v1455_v25 = vmul.f32 -1.442695, %v971_v16  ;;  %v812_v26 = vadd.f32 %v811_v9, %v594_v21 }
 0x119   : > { %1610 = vpow2.f32 %v1454_v19  ;;  %v972_v28 = vadd.f32 %v916_v24, %v810_v20 }
 0x11a   : > { %1612 = vrcp.f32 %v1015_v15  ;;  %v973_v30 = vadd.f32 %v916_v24, %v812_v26  ;;  %v598_v31 = vpop.f32.mrb[16].mxu1 }
 0x11b   : > { %v821_v32 = vpop.f32.mrb[18].mxu0  ;;  %v1595_v33 = vpop.eup %1594  ;;  %1614 = vpow2.f32 %v1455_v25  ;;  %v1456_v34 = vmul.f32 -1.442695, %v972_v28  ;;  %v816_v35 = vadd.f32 %v815_v18, %v598_v31  ;;  %v1144_v31 = vld [vmem:[%s2156_s23 + $0x10] sm:$0xff] }
 0x11c   : > { %v600_v36 = vpop.f32.mrb[17].mxu1  ;;  %v823_v37 = vpop.f32.mrb[19].mxu0  ;;  %1616 = vpow2.f32 %v1449_v23  ;;  %v1062_v39 = vadd.f32 1.0, %v1595_v33  ;;  %v1457_v40 = vmul.f32 -1.442695, %v973_v30 }
 0x11d   : > { %v1597_v38 = vpop.eup %1596  ;;  %v818_v41 = vadd.f32 %v817_v22, %v600_v36  ;;  %1618 = vrcp.f32 %v1016_v27  ;;  %v974_v1 = vadd.f32 %v921_v43, %v816_v35  ;;  %v1143_v27 = vld [vmem:[%s2156_s23 + $0x8] sm:$0xff]  ;;  %v936_v28 = vpop.permute.xlu1 %935 }
 0x11e   : > { %v1599_v42 = vpop.eup %1598  ;;  %1620 = vrcp.f32 %v1062_v39  ;;  %v604_v45 = vpop.f32.mrb[18].mxu1  ;;  %v1018_v62 = vadd.f32 1.0, %v1597_v38 }
 0x11f   : > { %v1601_v44 = vpop.eup %1600  ;;  %v827_v46 = vpop.f32.mrb[20].mxu0  ;;  %1622 = vpow2.f32 %v1456_v34  ;;  %v822_v49 = vadd.f32 %v821_v32, %v604_v45  ;;  %v1019_v9 = vadd.f32 1.0, %v1599_v42  ;;  %v975_v14 = vadd.f32 %v921_v43, %v818_v41 }
 0x120   : > { %v1603_v47 = vpop.eup %1602  ;;  %v1063_v48 = vadd.f32 1.0, %v1601_v44  ;;  %v606_v50 = vpop.f32.mrb[19].mxu1  ;;  %1624 = vpow2.f32 %v1457_v40  ;;  %v1458_v18 = vmul.f32 -1.442695, %v974_v1 }
 0x121   : > { %v829_v51 = vpop.f32.mrb[21].mxu0  ;;  %v1605_v52 = vpop.eup %1604  ;;  %v1064_v54 = vadd.f32 1.0, %v1603_v47  ;;  %v824_v55 = vadd.f32 %v823_v37, %v606_v50  ;;  %v976_v19 = vadd.f32 %v926_v57, %v822_v49  ;;  %v1459_v33 = vmul.f32 -1.442695, %v975_v14  ;;  %v1145_v47 = vld [vmem:[%s2156_s23 + $0x18] sm:$0xff] }
 0x122   : > { %v2149_v56 = vpop.eup %1606  ;;  %1626 = vrcp.f32 %v1063_v48  ;;  %v610_v59 = vpop.f32.mrb[20].mxu1  ;;  %v1020_v12 = vadd.f32 1.0, %v1605_v52 }
 0x123   : > { %v1609_v58 = vpop.eup %1608  ;;  %1628 = vrcp.f32 %v1064_v54  ;;  %v833_v60 = vpop.f32.mrb[22].mxu0  ;;  %v828_v2 = vadd.f32 %v827_v46, %v610_v59  ;;  %v977_v29 = vadd.f32 %v926_v57, %v824_v55  ;;  %v1460_v38 = vmul.f32 -1.442695, %v976_v19 }
 0x124   : > { %v1611_v61 = vpop.eup %1610  ;;  %v1065_v63 = vadd.f32 1.0, %v1609_v58  ;;  %v612_v3 = vpop.f32.mrb[21].mxu1  ;;  %1630 = vrcp.f32 %v1017_v53 }
 0x125   : > { %v835_v4 = vpop.f32.mrb[23].mxu0  ;;  %v2158_v5 = vpop.eup %1612  ;;  %v1066_v6 = vadd.f32 1.0, %v1611_v61  ;;  %v830_v7 = vadd.f32 %v829_v51, %v612_v3  ;;  %v978_v44 = vadd.f32 %v931_v10, %v828_v2  ;;  %v1461_v49 = vmul.f32 -1.442695, %v977_v29  ;;  %v1146_v51 = vld [vmem:[%s2156_s23 + $0x20] sm:$0xff]  ;;  %v1147_v2 = vld [vmem:[%s2156_s23 + $0x28] sm:$0xff] }
 0x126   : > { %v1615_v8 = vpop.eup %1614  ;;  %1632 = vrcp.f32 %v1065_v63  ;;  %v616_v15 = vpop.f32.mrb[22].mxu1 }
 0x127   : > { %v2160_v11 = vpop.eup %1616  ;;  %1634 = vrcp.f32 %v1066_v6  ;;  %v1067_v0 = vadd.f32 1.0, %v1615_v8  ;;  %v839_v16 = vpop.f32.mrb[24].mxu0  ;;  %v834_v20 = vadd.f32 %v833_v60, %v616_v15  ;;  %v979_v52 = vadd.f32 %v931_v10, %v830_v7 }
 0x128   : > { %v2163_v17 = vpop.eup %1618  ;;  %1636 = vrcp.f32 %v1018_v62  ;;  %v618_v21 = vpop.f32.mrb[23].mxu1 }
 0x129   : > { %v841_v22 = vpop.f32.mrb[25].mxu0  ;;  %v1621_v23 = vpop.eup %1620  ;;  %1638 = vrcp.f32 %v1067_v0  ;;  %v836_v24 = vadd.f32 %v835_v4, %v618_v21  ;;  %v980_v58 = vadd.f32 %v936_v28, %v834_v20  ;;  %v1462_v4 = vmul.f32 -1.442695, %v978_v44 }
 0x12a   : > { %v1623_v25 = vpop.eup %1622  ;;  %1640 = vrcp.f32 %v1019_v9  ;;  %v2165_v26 = vmul.f32 %v1621_v23, %v1142_v13  ;;  %v622_v34 = vpop.f32.mrb[24].mxu1  ;;  %v1463_v13 = vmul.f32 -1.442695, %v979_v52  ;;  %v1148_v23 = vld [vmem:[%s2156_s23 + $0x30] sm:$0xff] }
 0x12b   : > { %v1625_v30 = vpop.eup %1624  ;;  %1642 = vrcp.f32 %v1020_v12  ;;  %v1068_v32 = vadd.f32 1.0, %v1623_v25  ;;  %v845_v35 = vpop.f32.mrb[26].mxu0  ;;  %v840_v39 = vadd.f32 %v839_v16, %v622_v34  ;;  %v981_v6 = vadd.f32 %v936_v28, %v836_v24  ;;  %v1149_v28 = vld [vmem:[%s2156_s23 + $0x38] sm:$0xff]  ;;  %s1718_s23 = sshll.u32 %s1828_s22, 4  ;;  %s1719_s23 = int_to_ptr.vmem [resolvable:$false] %s1718_s23 }
 0x12c   : > { %v1627_v36 = vpop.eup %1626  ;;  %v1069_v37 = vadd.f32 1.0, %v1625_v30  ;;  %1644 = vpow2.f32 %v1458_v18  ;;  %v624_v40 = vpop.f32.mrb[25].mxu1  ;;  %v1464_v18 = vmul.f32 -1.442695, %v980_v58  ;;  %s1720_s16 = scalar_lea.vmem %s1719_s23, 2048  ;;  %p1721_p1 = scmp.lt.s32.totalorder %s2235_s10, %s1719_s23 }
 0x12d   : > { %v847_v41 = vpop.f32.mrb[27].mxu0  ;;  %v1629_v42 = vpop.eup %1628  ;;  %v2169_v43 = vmul.f32 %v1627_v36, %v1143_v27  ;;  %1646 = vrcp.f32 %v1068_v32  ;;  %v842_v45 = vadd.f32 %v841_v22, %v624_v40  ;;  %v1465_v24 = vmul.f32 -1.442695, %v981_v6  ;;  %p1722_p2 = scmp.lt.s32.totalorder %s1720_s16, %s1714_s21 }
 0x12e   : > { %v2171_v46 = vmul.f32 %v1629_v42, %v1144_v31  ;;  %1648 = vrcp.f32 %v1069_v37  ;;  %v941_v48 = vpop.permute.xlu0 %940  ;;  %v2174_v50 = vpop.eup %1630 }
 0x12f   : > { %1650 = vpow2.f32 %v1459_v33  ;;  %v982_v53 = vadd.f32 %v941_v48, %v840_v39  ;;  %v628_v54 = vpop.f32.mrb[26].mxu1  ;;  %v851_v55 = vpop.f32.mrb[28].mxu0  ;;  %v983_v59 = vadd.f32 %v941_v48, %v842_v45  ;;  %p1723_p3 = por %p1722_p2, %p1721_p1 }
 0x130   : > { %v1633_v57 = vpop.eup %1632  ;;  %1652 = vpow2.f32 %v1460_v38  ;;  %v846_v60 = vadd.f32 %v845_v35, %v628_v54  ;;  %v630_v61 = vpop.f32.mrb[27].mxu1  ;;  %v1021_v35 = vadd.f32 1.0, %v2160_v11 }
 0x131   : > { %v853_v62 = vpop.f32.mrb[29].mxu0  ;;  %v1635_v63 = vpop.eup %1634  ;;  %v2177_v1 = vmul.f32 %v1633_v57, %v1145_v47  ;;  %v848_v8 = vadd.f32 %v847_v41, %v630_v61  ;;  %1654 = vpow2.f32 %v1461_v49  ;;  %p1724_p5 = pnand %p1723_p3, %p1717_p0 }
 0x132   : > { %v946_v3 = vpop.permute.xlu1 %945  ;;  %v2180_v9 = vpop.eup %1636  ;;  %v2182_v7 = vmul.f32 %v1635_v63, %v1146_v51  ;;  %1656 = vtanh.f32 %v982_v53 }
 0x133   : > { %v984_v10 = vadd.f32 %v946_v3, %v846_v60  ;;  %v1639_v12 = vpop.eup %1638  ;;  %v634_v0 = vpop.f32.mrb[28].mxu1  ;;  %1658 = vtanh.f32 %v983_v59  ;;  %v985_v30 = vadd.f32 %v946_v3, %v848_v8 }
 0x134   : > { %v857_v14 = vpop.f32.mrb[30].mxu0  ;;  %v2184_v15 = vpop.eup %1640  ;;  %v2186_v16 = vmul.f32 %v1639_v12, %v1147_v2  ;;  %v852_v19 = vadd.f32 %v851_v55, %v634_v0  ;;  %1660 = vpow2.f32 %v1462_v4 }
 0x135   : > { %v636_v20 = vpop.f32.mrb[29].mxu1  ;;  %v859_v21 = vpop.f32.mrb[31].mxu0  ;;  %1662 = vtanh.f32 %v984_v10 }
 0x136   : > { %v2188_v22 = vpop.eup %1642  ;;  %v854_v25 = vadd.f32 %v853_v62, %v636_v20  ;;  %v951_v29 = vpop.permute.xlu0 %950  ;;  %1664 = vpow2.f32 %v1463_v13 }
 0x137   : > { %v1645_v27 = vpop.eup %1644  ;;  %v986_v32 = vadd.f32 %v951_v29, %v852_v19  ;;  %v640_v33 = vpop.f32.mrb[30].mxu1  ;;  %1666 = vpow2.f32 %v1464_v18 }
 0x138   : > { %v1647_v31 = vpop.eup %1646  ;;  %v858_v37 = vadd.f32 %v857_v14, %v640_v33  ;;  %v642_v38 = vpop.f32.mrb[31].mxu1  ;;  %v1110_v41 = vadd.f32 1.0, %v1645_v27  ;;  %1668 = vpow2.f32 %v1465_v24  ;;  %v987_v47 = vadd.f32 %v951_v29, %v854_v25 }
 0x139   : > { %v1649_v34 = vpop.eup %1648  ;;  %v2193_v36 = vmul.f32 %v1647_v31, %v1148_v23  ;;  %v860_v42 = vadd.f32 %v859_v21, %v642_v38  ;;  %v956_v45 = vpop.permute.xlu1 %955  ;;  %1670 = vtanh.f32 %v985_v30 }
 0x13a   : > { %v1651_v39 = vpop.eup %1650  ;;  %v2195_v40 = vmul.f32 %v1649_v34, %v1149_v28  ;;  %1672 = vtanh.f32 %v986_v32  ;;  %v988_v11 = vadd.f32 %v956_v45, %v858_v37 }
 0x13b   : > { %v1653_v44 = vpop.eup %1652  ;;  %1674 = vrcp.f32 %v1021_v35  ;;  %v989_v49 = vadd.f32 %v956_v45, %v860_v42  ;;  %v1111_v52 = vadd.f32 1.0, %v1651_v39 }
 0x13c   : > { %v1655_v48 = vpop.eup %1654  ;;  %1676 = vrcp.f32 %v1110_v41  ;;  %v1112_v59 = vadd.f32 1.0, %v1653_v44 }
 0x13d   : > { %v1657_v51 = vpop.eup %1656  ;;  %1678 = vtanh.f32 %v987_v47  ;;  %v1113_v3 = vadd.f32 1.0, %v1655_v48 }
 0x13e   : > { %v1659_v53 = vpop.eup %1658  ;;  %v1158_v54 = vmul.f32 %v1657_v51, %v2149_v56  ;;  %1680 = vtanh.f32 %v988_v11 }
 0x13f   : > { %v1661_v55 = vpop.eup %1660  ;;  %v1159_v57 = vmul.f32 %v1659_v53, %v2158_v5  ;;  %1682 = vtanh.f32 %v989_v49 }
 0x140   : > { %v1663_v58 = vpop.eup %1662  ;;  %v1166_v60 = vadd.f32 %v1158_v54, %v2165_v26  ;;  %1684 = vrcp.f32 %v1111_v52  ;;  %v1114_v5 = vadd.f32 1.0, %v1661_v55 }
 0x141   : > { %v1665_v61 = vpop.eup %1664  ;;  %v1167_v62 = vadd.f32 %v1159_v57, %v2169_v43  ;;  %v1160_v63 = vmul.f32 %v1663_v58, %v2163_v17 }
 0x142   : > { %v1667_v2 = vpop.eup %1666  ;;  %1686 = vtanh.f32 %v1166_v60  ;;  %1198 = vst [vmem:[%s2208_s30] sm:$0xff] %v1166_v60  ;;  %v1115_v43 = vadd.f32 1.0, %v1665_v61 }
 0x143   : > { %v1669_v56 = vpop.eup %1668  ;;  %1688 = vtanh.f32 %v1167_v62  ;;  %1199 = vst [vmem:[%s2208_s30 + $0x8] sm:$0xff] %v1167_v62  ;;  %v1168_v26 = vadd.f32 %v1160_v63, %v2171_v46  ;;  %v1116_v13 = vadd.f32 1.0, %v1667_v2 }
 0x144   : > { %v1671_v4 = vpop.eup %1670  ;;  %1690 = vrcp.f32 %v1112_v59  ;;  %v1117_v14 = vadd.f32 1.0, %v1669_v56 }
 0x145   : > { %v1673_v17 = vpop.eup %1672  ;;  %1692 = vtanh.f32 %v1168_v26  ;;  %1200 = vst [vmem:[%s2208_s30 + $0x10] sm:$0xff] %v1168_v26  ;;  %v1161_v6 = vmul.f32 %v1671_v4, %v2174_v50 }
 0x146   : > { %v1675_v8 = vpop.eup %1674  ;;  %1694 = vrcp.f32 %v1113_v3  ;;  %v1162_v10 = vmul.f32 %v1673_v17, %v2180_v9 }
 0x147   : > { %v1677_v12 = vpop.eup %1676  ;;  %1696 = vrcp.f32 %v1114_v5  ;;  %v1169_v46 = vadd.f32 %v1161_v6, %v2177_v1 }
 0x148   : > { %v1679_v0 = vpop.eup %1678  ;;  %1698 = vrcp.f32 %v1115_v43  ;;  %v1170_v18 = vadd.f32 %v1162_v10, %v2182_v7 }
 0x149   : > { %v1681_v19 = vpop.eup %1680  ;;  %1700 = vtanh.f32 %v1169_v46  ;;  %1201 = vst [vmem:[%s2208_s30 + $0x18] sm:$0xff] %v1169_v46  ;;  %v1163_v50 = vmul.f32 %v1679_v0, %v2184_v15 }
 0x14a   : > { %v1683_v20 = vpop.eup %1682  ;;  %1702 = vtanh.f32 %v1170_v18  ;;  %1202 = vst [vmem:[%s2208_s30 + $0x20] sm:$0xff] %v1170_v18  ;;  %v1164_v9 = vmul.f32 %v1681_v19, %v2188_v22 }
 0x14b   : > { %v1685_v1 = vpop.eup %1684  ;;  %1704 = vrcp.f32 %v1116_v13  ;;  %v1171_v21 = vadd.f32 %v1163_v50, %v2186_v16  ;;  %v1165_v7 = vmul.f32 %v1683_v20, %v1675_v8 }
 0x14c   : > { %v1687_v23 = vpop.eup %1686  ;;  %1706 = vrcp.f32 %v1117_v14  ;;  %v1172_v15 = vadd.f32 %v1164_v9, %v2193_v36 }
 0x14d   : > { %v1689_v24 = vpop.eup %1688  ;;  %v1182_v25 = vmul.f32 %v1687_v23, %v1677_v12  ;;  %1708 = vtanh.f32 %v1171_v21  ;;  %1203 = vst [vmem:[%s2208_s30 + $0x28] sm:$0xff] %v1171_v21  ;;  %v1173_v22 = vadd.f32 %v1165_v7, %v2195_v40 }
 0x14e   : > { %v1691_v16 = vpop.eup %1690  ;;  %v1183_v27 = vmul.f32 %v1689_v24, %v1685_v1  ;;  %1710 = vtanh.f32 %v1172_v15  ;;  %1204 = vst [vmem:[%s2208_s30 + $0x30] sm:$0xff] %v1172_v15 }
 0x14f   : > { %v1693_v28 = vpop.eup %1692  ;;  %1190 = vst [vmem:[%s2240_s19] sm:$0xff] %v1182_v25  ;;  %1712 = vtanh.f32 %v1173_v22  ;;  %1205 = vst [vmem:[%s2208_s30 + $0x38] sm:$0xff] %v1173_v22 }
 0x150   : > { %v1695_v29 = vpop.eup %1694  ;;  %1191 = vst [vmem:[%s2240_s19 + $0x8] sm:$0xff] %v1183_v27  ;;  %v1184_v30 = vmul.f32 %v1693_v28, %v1691_v16 }
 0x151   : > { %1727 = shalt.err (!%p1724_p5)
}
 0x152   : > { %s1728_s30 = scalar_lea.hbm %s2233_s18, 1024  ;;  %s1732_s22 = scalar_lea.hbm %s2344_s7, 2048 }
 0x153   : > { %p1729_p6 = scmp.ne.s32.totalorder %s2233_s18, %s1728_s30  ;;  %p1733_p10 = scmp.lt.u32.totalorder %s2233_s18, %s2344_s7 }
 0x154   : > { %p1734_p11 = scmp.lt.u32.totalorder %s1732_s22, %s1728_s30  ;;  %p1736_p13 = scmp.lt.u32.totalorder %s1728_s30, %s2233_s18 }
 0x155   : > { %p1730_p7 = pnand %p1729_p6, %p1912_p4 }
 0x156   : > { %p1735_p12 = por %p1734_p11, %p1733_p10 }
 0x157   : > { %p1731_p9 = pneg %p1730_p7 }
 0x158   : > { %p1737_p0 = por %p1736_p13, %p1735_p12 }
 0x15a   : > { %p1738_p1 = pnand %p1737_p0, %p1731_p9 }
 0x15c   : > { %1741 = shalt.err (!%p1738_p1)
}
 0x15d   : > { %s1829_s21 = smov 256   ;;  %s1830_s16 = smov 16   ;;  %v1697_v31 = vpop.eup %1696  ;;  %1192 = vst [vmem:[%s2240_s19 + $0x10] sm:$0xff] %v1184_v30 }
 0x15e   : > { %1520 = dma.vmem_to_hbm [thread:$0]  (%p1912_p4), %s2235_s10, 1024, %s2233_s18, %s1212_s20, %s1829_s21, %s1829_s21, %s1830_s16   ;;  %v1699_v32 = vpop.eup %1698 }
 0x15f   : > { %v1701_v33 = vpop.eup %1700  ;;  %s1227_s8 = sshll.u32 %s2240_s19, 4  ;;  %s2348_s10 = sshll.u32 %s1816_s27, 10  ;;  %s2284_s8 = int_to_ptr.vmem [resolvable:$true] %s1227_s8 }
 0x160   : > { %v1703_v34 = vpop.eup %1702  ;;  %v1185_v35 = vmul.f32 %v1701_v33, %v1695_v29  ;;  %s2282_s30 = scalar_lea.hbm %s2343_s6, %s2348_s10  ;;  %s1207_s12 = scalar_lea.sflag [#allocation3], %s2198_s15 }
 0x161   : > { %v1705_v36 = vpop.eup %1704  ;;  %v1186_v37 = vmul.f32 %v1703_v34, %v1697_v31  ;;  %s1742_s17 = scalar_lea.vmem %s2284_s8, 1024  ;;  %s1831_s22 = smov [#allocation2]  }
 0x162   : > { %v1707_v38 = vpop.eup %1706  ;;  %1193 = vst [vmem:[%s2240_s19 + $0x18] sm:$0xff] %v1185_v35  ;;  %p1743_p2 = scmp.ne.s32.totalorder %s2284_s8, %s1742_s17  ;;  %s1746_s27 = sshll.u32 %s1831_s22, 4  ;;  %s1747_s27 = int_to_ptr.vmem [resolvable:$false] %s1746_s27 }
 0x163   : > { %v1709_v39 = vpop.eup %1708  ;;  %1194 = vst [vmem:[%s2240_s19 + $0x20] sm:$0xff] %v1186_v37  ;;  %s1748_s23 = scalar_lea.vmem %s1747_s27, 2048  ;;  %p1749_p6 = scmp.lt.s32.totalorder %s2284_s8, %s1747_s27 }
 0x164   : > { %v1711_v40 = vpop.eup %1710  ;;  %v1187_v41 = vmul.f32 %v1709_v39, %v1699_v32  ;;  %p1744_p3 = pnand %p1743_p2, %p1912_p4  ;;  %p1750_p7 = scmp.lt.s32.totalorder %s1748_s23, %s1742_s17 }
 0x165   : > { %v1713_v42 = vpop.eup %1712  ;;  %v1188_v44 = vmul.f32 %v1711_v40, %v1705_v36 }
 0x166   : > { %1195 = vst [vmem:[%s2240_s19 + $0x28] sm:$0xff] %v1187_v41  ;;  %v1189_v45 = vmul.f32 %v1713_v42, %v1707_v38  ;;  %p1745_p5 = pneg %p1744_p3  ;;  %p1751_p9 = por %p1750_p7, %p1749_p6 }
 0x167   : > { %1196 = vst [vmem:[%s2240_s19 + $0x30] sm:$0xff] %v1188_v44 }
 0x168   : > { %1197 = vst [vmem:[%s2240_s19 + $0x38] sm:$0xff] %v1189_v45  ;;  %p1752_p10 = pnand %p1751_p9, %p1745_p5 }
 0x16a   : > { %1755 = shalt.err (!%p1752_p10)
}
 0x16b   : > { %s1756_s19 = scalar_lea.hbm %s2282_s30, 1024  ;;  %s1760_s20 = scalar_lea.hbm %s2343_s6, 2048 }
 0x16c   : > { %p1757_p11 = scmp.ne.s32.totalorder %s2282_s30, %s1756_s19  ;;  %p1761_p0 = scmp.lt.u32.totalorder %s2282_s30, %s2343_s6 }
 0x16d   : > { %p1762_p1 = scmp.lt.u32.totalorder %s1760_s20, %s1756_s19  ;;  %p1764_p3 = scmp.lt.u32.totalorder %s1756_s19, %s2282_s30 }
 0x16e   : > { %p1758_p12 = pnand %p1757_p11, %p1912_p4 }
 0x16f   : > { %p1763_p2 = por %p1762_p1, %p1761_p0 }
 0x170   : > { %p1759_p13 = pneg %p1758_p12 }
 0x171   : > { %p1765_p5 = por %p1764_p3, %p1763_p2 }
 0x173   : > { %p1766_p6 = pnand %p1765_p5, %p1759_p13 }
 0x175   : > { %1769 = shalt.err (!%p1766_p6)
}
 0x176   : > { %1519 = dma.vmem_to_hbm [thread:$0]  (%p1912_p4), %s2284_s8, 1024, %s2282_s30, %s1207_s12, %s1829_s21, %s1829_s21, %s1830_s16  }
 0x177 PF: > { %p1530_p7 = scmp.ge.s32.totalorder %s1824_s29, 2  ;;  %s1260_s17 = sand.u32 1, %s1804_s24  }
 0x178   : > { %s1261_s23 = scalar_lea.sflag [#allocation3], %s1260_s17 }
 0x179   : > { %p1524_p9 = pnand %p1530_p7, %p1919_p8 }
 0x17b   : > { %1795 = dma.done.wait (!%p1524_p9), %s1261_s23, 1024  }
 0x17c   : > { %1797 = vsyncadd (!%p1524_p9), %s1261_s23, 4294966272  ;;  %s1270_s11 = scalar_lea.sflag [#allocation5], %s1260_s17 }
 0x17d   : > { %1799 = dma.done.wait (!%p1524_p9), %s1270_s11, 1024  }
 0x17e   : > { %1801 = vsyncadd (!%p1524_p9), %s1270_s11, 4294966272  ;;  %s24_s29 = sadd.s32 1, %s1824_s29   ;;  %s2349_s24 = smov %s1808_s25 }
 0x17f   : > { %p21_p10 = scmp.ge.s32.totalorder %s24_s29, 4   ;;  %s2350_s25 = smov %s1812_s26 }
 0x180   : > { %s2351_s26 = smov %s1925_s14  ;;  %s2352_s27 = smov %s1820_s28 }
 0x181   : > { %s2353_s28 = smov %s2355_s9  ;;  %23 = sbr.rel (!%p21_p10) target bundleno = 6 (0x6), region = 102 }
 0x188   :  { %1275 = vsyncpa [#allocation3], 1 }
 0x189   :  { %1277 = vsyncpa [#allocation3 + $0x1], 1 }
 0x18a   :  { %1278 = vsyncpa [#allocation5], 1 }
 0x18b   :  { %1280 = vsyncpa [#allocation5 + $0x1], 1 }

</bundles_post_ra>
